<compile_context>
chip_gen: v7x
topology: tpu7x:2x2x1
jax: 0.10.0
libtpu: 0.0.40
codegen_flags: <defaults>
</compile_context>

<pallas_src>
import functools
import math

import jax
import jax.numpy as jnp
from jax import lax
from jax.experimental import pallas as pl
from jax.experimental.pallas import tpu as pltpu

_TARGET_LANE = 1024   # desired lane-dense slab width (multiple of 128)
_TILE_ROWS = 512      # rows per grid step -> 512*1024*4B = 2 MiB per f32 stream


def _focal_loss_kernel(x_ref, t_ref, w_ref, o_ref, *,
                       alpha: float, gamma: float, num_classes: int):
    x = x_ref[...]        # (T, lane)       logits
    t = t_ref[...]        # (T, lane)       one-hot / soft targets
    w_small = w_ref[...]  # (T, lane // C)  anchor-wise weights (not broadcast)

    lane = x.shape[-1]
    lw = w_small.shape[-1]
    c = num_classes

    # Expand anchor weights over their C classes entirely on-chip:
    #     w_full[r, l] = w_small[r, l // C]
    # via a one-hot expansion matmul on the (otherwise idle) MXU.  This avoids
    # ever materializing the (B, A, C) broadcast weight tensor in HBM.
    a_idx = lax.broadcasted_iota(jnp.int32, (lw, lane), 0)
    l_idx = lax.broadcasted_iota(jnp.int32, (lw, lane), 1)
    d = l_idx - a_idx * c
    expand = jnp.logical_and(d >= 0, d < c).astype(jnp.float32)   # (lw, lane)
    w = jnp.dot(w_small.astype(jnp.float32), expand,
                preferred_element_type=jnp.float32).astype(x.dtype)

    # Shared transcendental: e = exp(-|x|) feeds both sigmoid and log1p
    # (one EUP exp instead of two).
    e = jnp.exp(-jnp.abs(x))
    inv = 1.0 / (1.0 + e)
    #   x >= 0: sigmoid(x) = 1 / (1 + e);  x < 0: sigmoid(x) = e / (1 + e)
    pred_sigmoid = jnp.where(x >= 0.0, inv, e * inv)

    # alpha_weight = t*alpha + (1-t)*(1-alpha) = (1-alpha) + t*(2*alpha - 1)
    alpha_weight = (1.0 - alpha) + t * (2.0 * alpha - 1.0)
    # pt = t*(1-p) + (1-t)*p = p + t*(1 - 2*p)
    pt = pred_sigmoid + t * (1.0 - 2.0 * pred_sigmoid)

    # focal term pt**gamma: integer gamma -> repeated multiplies (gamma=2 -> pt*pt).
    g = float(gamma)
    if g == 0.0:
        pt_pow = jnp.ones_like(pt)
    elif g.is_integer() and 0.0 < g <= 8.0:
        pt_pow = pt
        for _ in range(int(g) - 1):
            pt_pow = pt_pow * pt
    else:
        # TODO(synk): non-integer gamma uses pow -> log(pt); fine for the
        # forward value but NaN-grad risk if this kernel is ever differentiated.
        pt_pow = jnp.power(pt, gamma)

    # Stable sigmoid BCE: max(x, 0) - x*t + log1p(exp(-|x|))
    bce = jnp.maximum(x, 0.0) - x * t + jnp.log1p(e)

    o_ref[...] = (alpha_weight * pt_pow) * bce * w


def sigmoid_focal_classification_loss(logits, targets, weights,
                                      gamma: float = 2.0, alpha: float = 0.25):
    """JAX/Pallas equivalent of SigmoidFocalClassificationLoss.forward.

    Args:
      logits:  (B, A, C) float predicted logits.
      targets: (B, A, C) float one-hot (or soft) classification targets.
      weights: (B, A)    float anchor-wise weights (a (B, A, 1) tensor is
               also accepted, mirroring the torch unsqueeze).

    Returns:
      (B, A, C) weighted focal loss (no reduction).
    """
    B, A, C = logits.shape
    assert targets.shape == (B, A, C)
    if weights.ndim == 3:
        assert weights.shape == (B, A, 1), (
            f"expected anchor-wise weights (B, A) or (B, A, 1), got {weights.shape}")
        weights = weights[..., 0]
    assert weights.shape == (B, A)

    n_anchors = B * A

    # Lane width: smallest common multiple of C and 128, scaled toward ~1024,
    # so each slab row holds an integer number of anchors and the weight slab
    # is a free reshape of the flat (B*A,) weights.
    unit = (C * 128) // math.gcd(C, 128)
    lane = unit * max(1, _TARGET_LANE // unit)
    apr = lane // C                                   # anchors per slab row
    rows = -(-n_anchors // apr)
    pad_anchors = rows * apr - n_anchors

    def to_rows(a, width):
        flat = a.reshape(-1)
        p = rows * width - flat.shape[0]
        if p:                                         # only for ragged shapes
            flat = jnp.pad(flat, (0, p))
        return flat.reshape(rows, width)

    x2 = to_rows(logits, lane)
    t2 = to_rows(targets, lane)
    w2 = to_rows(weights, apr)

    # Big blocks for HBM roofline; keep >= 2 grid steps when possible so both
    # v7x TensorCores share the work. Partial final blocks are handled by
    # Pallas (masked OOB reads/writes), so rows is never rounded up.
    tile_rows = min(_TILE_ROWS, rows)
    if rows > 8 and pl.cdiv(rows, tile_rows) < 2:
        tile_rows = max(8, (((rows + 1) // 2) + 7) // 8 * 8)
    grid = pl.cdiv(rows, tile_rows)

    kernel = functools.partial(_focal_loss_kernel, alpha=float(alpha),
                               gamma=float(gamma), num_classes=C)

    out2 = pl.pallas_call(
        kernel,
        out_shape=jax.ShapeDtypeStruct((rows, lane), logits.dtype),
        grid_spec=pltpu.PrefetchScalarGridSpec(
            num_scalar_prefetch=0,
            grid=(grid,),
            in_specs=[
                pl.BlockSpec((tile_rows, lane), lambda r: (r, 0)),
                pl.BlockSpec((tile_rows, lane), lambda r: (r, 0)),
                pl.BlockSpec((tile_rows, apr), lambda r: (r, 0)),
            ],
            out_specs=pl.BlockSpec((tile_rows, lane), lambda r: (r, 0)),
        ),
        compiler_params=pltpu.CompilerParams(
            dimension_semantics=("parallel",),
            vmem_limit_bytes=48 * 1024 * 1024,
        ),
    )(x2, t2, w2)

    if pad_anchors:
        return out2.reshape(-1)[: n_anchors * C].reshape(B, A, C)
    return out2.reshape(B, A, C)           # free reshape in the common case


def _reference(logits, targets, weights, gamma=2.0, alpha=0.25):
    pred_sigmoid = jax.nn.sigmoid(logits)
    alpha_weight = targets * alpha + (1 - targets) * (1 - alpha)
    pt = targets * (1.0 - pred_sigmoid) + (1.0 - targets) * pred_sigmoid
    focal_weight = alpha_weight * jnp.power(pt, gamma)
    bce = jnp.maximum(logits, 0.0) - logits * targets + jnp.log1p(jnp.exp(-jnp.abs(logits)))
    return focal_weight * bce * weights[:, :, None]


if __name__ == "__main__":
    key = jax.random.PRNGKey(0)
    k1, k2, k3 = jax.random.split(key, 3)

    B, A, C = 2, 128, 8  # batch, #anchors, #classes
    logits = jax.random.normal(k1, (B, A, C), dtype=jnp.float32) * 3.0
    cls = jax.random.randint(k2, (B, A), 0, C)
    targets = jax.nn.one_hot(cls, C, dtype=jnp.float32)
    weights = jax.random.uniform(k3, (B, A), dtype=jnp.float32)

    out = sigmoid_focal_classification_loss(logits, targets, weights)
    out = jax.block_until_ready(out)

    ref = _reference(logits, targets, weights)
    assert out.shape == (B, A, C)
    assert jnp.allclose(out, ref, atol=1e-5, rtol=1e-4), \
        f"max err {jnp.max(jnp.abs(out - ref))}"

    print("KERNEL_OK")
</pallas_src>

<mosaic_0001>
module attributes {stable_mosaic.version = 11 : i64} {
  func.func @_focal_loss_kernel(%arg0: i32, %arg1: memref<2x1024xf32, #tpu.memory_space<vmem>>, %arg2: memref<2x1024xf32, #tpu.memory_space<vmem>>, %arg3: memref<2x128xf32, #tpu.memory_space<vmem>>, %arg4: memref<2x1024xf32, #tpu.memory_space<vmem>>) attributes {dimension_semantics = [#tpu.dimension_semantics<parallel>], iteration_bounds = array<i64: 1>, scalar_prefetch = 0 : i64, scratch_operands = 0 : i64, tpu.core_type = #tpu.core_type<tc>, window_params = [{transform_indices = @transform_0, window_bounds = array<i64: 2, 1024>}, {transform_indices = @transform_1, window_bounds = array<i64: 2, 1024>}, {transform_indices = @transform_2, window_bounds = array<i64: 2, 128>}, {transform_indices = @transform_3, window_bounds = array<i64: 2, 1024>}]} {
    %c0 = arith.constant 0 : index
    %c0_0 = arith.constant 0 : index
    %0 = vector.load %arg1[%c0, %c0_0] : memref<2x1024xf32, #tpu.memory_space<vmem>>, vector<2x1024xf32>
    %c0_1 = arith.constant 0 : index
    %c0_2 = arith.constant 0 : index
    %1 = vector.load %arg2[%c0_1, %c0_2] : memref<2x1024xf32, #tpu.memory_space<vmem>>, vector<2x1024xf32>
    %c0_3 = arith.constant 0 : index
    %c0_4 = arith.constant 0 : index
    %2 = vector.load %arg3[%c0_3, %c0_4] : memref<2x128xf32, #tpu.memory_space<vmem>>, vector<2x128xf32>
    %3 = tpu.iota {dimensions = array<i32: 0>} : vector<128x1024xi32>
    %4 = tpu.iota {dimensions = array<i32: 1>} : vector<128x1024xi32>
    %c8_i32 = arith.constant 8 : i32
    %5 = vector.broadcast %c8_i32 : i32 to vector<128x1024xi32>
    %6 = arith.muli %3, %5 : vector<128x1024xi32>
    %7 = arith.subi %4, %6 : vector<128x1024xi32>
    %c0_i32 = arith.constant 0 : i32
    %8 = vector.broadcast %c0_i32 : i32 to vector<128x1024xi32>
    %9 = arith.cmpi sge, %7, %8 : vector<128x1024xi32>
    %c8_i32_5 = arith.constant 8 : i32
    %10 = vector.broadcast %c8_i32_5 : i32 to vector<128x1024xi32>
    %11 = arith.cmpi slt, %7, %10 : vector<128x1024xi32>
    %12 = arith.andi %9, %11 : vector<128x1024xi1>
    %13 = arith.extui %12 : vector<128x1024xi1> to vector<128x1024xi32>
    %14 = arith.sitofp %13 : vector<128x1024xi32> to vector<128x1024xf32>
    %cst = arith.constant dense<0.000000e+00> : vector<2x1024xf32>
    %15 = tpu.matmul %2, %14, %cst {dimension_numbers = #tpu.dot_dimension_numbers<[1], [0], [0], [1], [0, 0, 1, 1], [], []>} : vector<2x128xf32>, vector<128x1024xf32>, vector<2x1024xf32> -> vector<2x1024xf32>
    %16 = math.absf %0 : vector<2x1024xf32>
    %cst_6 = arith.constant 0.000000e+00 : f32
    %17 = vector.broadcast %cst_6 : f32 to vector<2x1024xf32>
    %18 = arith.subf %17, %16 : vector<2x1024xf32>
    %19 = math.exp %18 : vector<2x1024xf32>
    %cst_7 = arith.constant 1.000000e+00 : f32
    %20 = vector.broadcast %cst_7 : f32 to vector<2x1024xf32>
    %21 = arith.addf %20, %19 : vector<2x1024xf32>
    %cst_8 = arith.constant 1.000000e+00 : f32
    %22 = vector.broadcast %cst_8 : f32 to vector<2x1024xf32>
    %23 = arith.divf %22, %21 : vector<2x1024xf32>
    %cst_9 = arith.constant 0.000000e+00 : f32
    %24 = vector.broadcast %cst_9 : f32 to vector<2x1024xf32>
    %25 = arith.cmpf oge, %0, %24 : vector<2x1024xf32>
    %26 = arith.mulf %19, %23 : vector<2x1024xf32>
    %27 = arith.select %25, %23, %26 : vector<2x1024xi1>, vector<2x1024xf32>
    %cst_10 = arith.constant -5.000000e-01 : f32
    %28 = vector.broadcast %cst_10 : f32 to vector<2x1024xf32>
    %29 = arith.mulf %1, %28 : vector<2x1024xf32>
    %cst_11 = arith.constant 7.500000e-01 : f32
    %30 = vector.broadcast %cst_11 : f32 to vector<2x1024xf32>
    %31 = arith.addf %30, %29 : vector<2x1024xf32>
    %cst_12 = arith.constant 2.000000e+00 : f32
    %32 = vector.broadcast %cst_12 : f32 to vector<2x1024xf32>
    %33 = arith.mulf %32, %27 : vector<2x1024xf32>
    %cst_13 = arith.constant 1.000000e+00 : f32
    %34 = vector.broadcast %cst_13 : f32 to vector<2x1024xf32>
    %35 = arith.subf %34, %33 : vector<2x1024xf32>
    %36 = arith.mulf %1, %35 : vector<2x1024xf32>
    %37 = arith.addf %27, %36 : vector<2x1024xf32>
    %38 = arith.mulf %37, %37 : vector<2x1024xf32>
    %cst_14 = arith.constant 0.000000e+00 : f32
    %39 = vector.broadcast %cst_14 : f32 to vector<2x1024xf32>
    %40 = arith.maximumf %0, %39 : vector<2x1024xf32>
    %41 = arith.mulf %0, %1 : vector<2x1024xf32>
    %42 = arith.subf %40, %41 : vector<2x1024xf32>
    %43 = math.log1p %19 : vector<2x1024xf32>
    %44 = arith.addf %42, %43 : vector<2x1024xf32>
    %45 = arith.mulf %31, %38 : vector<2x1024xf32>
    %46 = arith.mulf %45, %44 : vector<2x1024xf32>
    %47 = arith.mulf %46, %15 : vector<2x1024xf32>
    %c0_15 = arith.constant 0 : index
    %c0_16 = arith.constant 0 : index
    %48 = vector.load %arg4[%c0_15, %c0_16] : memref<2x1024xf32, #tpu.memory_space<vmem>>, vector<2x1024xf32>
    tpu.vector_store %arg4[%c0_15, %c0_16], %47 {strides = array<i32>} : memref<2x1024xf32, #tpu.memory_space<vmem>>, vector<2x1024xf32>,
    return
  }
  func.func @transform_0(%arg0: i32) -> (i32, i32) {
    %c0_i32 = arith.constant 0 : i32
    %c0_i32_0 = arith.constant 0 : i32
    return %arg0, %c0_i32 : i32, i32
  }
  func.func @transform_1(%arg0: i32) -> (i32, i32) {
    %c0_i32 = arith.constant 0 : i32
    %c0_i32_0 = arith.constant 0 : i32
    return %arg0, %c0_i32 : i32, i32
  }
  func.func @transform_2(%arg0: i32) -> (i32, i32) {
    %c0_i32 = arith.constant 0 : i32
    %c0_i32_0 = arith.constant 0 : i32
    return %arg0, %c0_i32 : i32, i32
  }
  func.func @transform_3(%arg0: i32) -> (i32, i32) {
    %c0_i32 = arith.constant 0 : i32
    %c0_i32_0 = arith.constant 0 : i32
    return %arg0, %c0_i32 : i32, i32
  }
}

</mosaic_0001>

<bundles_post_ra>
// kernel: tpu_custom_call.1
= control target key start
LH: loop header
LB: loop body
LE: loop exit
PB: predicated region body
PF: predicated region fallthrough
CT: control target
= control target key end

     0   :  { %8 = vsyncpa [#allocation3], 0  ;;  %s2556_s0 = inlined_call_operand.hbm [shape: f32[2,1024], index: 0, kind: input, shape index: {}]   ;;  %s2557_s1 = inlined_call_operand.hbm [shape: f32[2,1024], index: 1, kind: input, shape index: {}]   ;;  %s2558_s2 = inlined_call_operand.vmem [shape: f32[2,128], index: 2, kind: input, shape index: {}]   ;;  %s2559_s3 = inlined_call_operand.hbm [shape: f32[2,1024], index: 3, kind: output, shape index: {}]  }
   0x1   :  { %9 = vsyncpa [#allocation6], 0 }
   0x2   :  { %10 = vsyncpa [#allocation4], 0  ;;  %s1740_s12 = smov [#allocation2]   ;;  %s1741_s14 = smov [#allocation5]  }
   0x3   :  { %s17_s13 = sshll.u32 %s1740_s12, 4  ;;  %s27_s15 = sshll.u32 %s1741_s14, 4  ;;  %s18_s13 = int_to_ptr.vmem [resolvable:$true] %s17_s13  ;;  %s28_s15 = int_to_ptr.vmem [resolvable:$true] %s27_s15 }
   0x4   :  { %s1668_s18 = scalar_lea.hbm %s2556_s0, 256 }
   0x5   :  { %p1669_p0 = scmp.ne.s32.totalorder %s2556_s0, %s1668_s18  ;;  %p1672_p1 = scmp.lt.u32.totalorder %s1668_s18, %s2556_s0 }
   0x7   :  { %p1674_p2 = pnand %p1672_p1, %p1669_p0 }
   0x9   :  { %1677 = shalt.err (!%p1674_p2)
}
   0xa   :  { %s1678_s23 = scalar_lea.vmem %s18_s13, 256  ;;  %p1683_p4 = scmp.lt.s32.totalorder %s18_s13, %s18_s13 }
   0xb   :  { %p1679_p3 = scmp.ne.s32.totalorder %s18_s13, %s1678_s23  ;;  %p1684_p5 = scmp.lt.s32.totalorder %s1678_s23, %s1678_s23 }
   0xd   :  { %p1685_p6 = por %p1684_p5, %p1683_p4 }
   0xf   :  { %p1686_p7 = pnand %p1685_p6, %p1679_p3 }
  0x11   :  { %1689 = shalt.err (!%p1686_p7)
}
  0x12   :  { %20 = dma.hbm_to_vmem [thread:$0]  %s2556_s0, 256, %s18_s13, [#allocation3]  }
  0x13   :  { %s1690_s28 = scalar_lea.hbm %s2557_s1, 256 }
  0x14   :  { %p1691_p8 = scmp.ne.s32.totalorder %s2557_s1, %s1690_s28  ;;  %p1694_p9 = scmp.lt.u32.totalorder %s1690_s28, %s2557_s1 }
  0x16   :  { %p1696_p10 = pnand %p1694_p9, %p1691_p8 }
  0x18   :  { %1699 = shalt.err (!%p1696_p10)
}
  0x19   :  { %s1700_s6 = scalar_lea.vmem %s28_s15, 256  ;;  %p1705_p12 = scmp.lt.s32.totalorder %s28_s15, %s28_s15 }
  0x1a   :  { %p1701_p11 = scmp.ne.s32.totalorder %s28_s15, %s1700_s6  ;;  %p1706_p13 = scmp.lt.s32.totalorder %s1700_s6, %s1700_s6 }
  0x1c   :  { %p1707_p0 = por %p1706_p13, %p1705_p12 }
  0x1e   :  { %p1708_p1 = pnand %p1707_p0, %p1701_p11 }
  0x20   :  { %1711 = shalt.err (!%p1708_p1)
}
  0x21   :  { %30 = dma.hbm_to_vmem [thread:$0]  %s2557_s1, 256, %s28_s15, [#allocation6]  }
  0x22   :  { %1734 = dma.done.wait [#allocation3], 256  }
  0x23   :  { %1735 = vsyncadd [#allocation3], 4294967040  ;;  %v44_v0 = vlaneseq }
  0x24   :  { %1736 = dma.done.wait [#allocation6], 256  }
  0x25   :  { %1737 = vsyncadd [#allocation6], 4294967040  ;;  %v2560_v1 = vmov 0.0   ;;  %v1792_v2 = vshrl.u32 %v44_v0, 7  ;;  %v1794_v3 = vand.u32 127, %v44_v0 }
  0x26   :  { %918 = vmatprep.mubr.f32.mxu0 %v2560_v1  ;;  %989 = vmatprep.mubr.f32.mxu1 %v2560_v1  ;;  %v2562_v24 = vmov 1.0|1.0  }
  0x27   :  { %2570 = vst [vmem:[#allocation11_spill] sm:$0xff] %v1792_v2  ;;  %v46_v4 = vadd.s32 8, %v1792_v2  ;;  %v1798_v5 = vadd.s32 128, %v1794_v3  ;;  %v1801_v6 = vmul.u32 8, %v1792_v2  ;;  %v1804_v7 = vadd.s32 384, %v1794_v3 }
  0x28   :  { %v47_v8 = vadd.s32 16, %v1792_v2  ;;  %v1816_v13 = vadd.s32 256, %v1794_v3  ;;  %v48_v14 = vadd.s32 24, %v1792_v2  ;;  %v49_v29 = vadd.s32 32, %v1792_v2 }
  0x29   :  { %v1807_v9 = vmul.u32 8, %v46_v4  ;;  %v87_v10 = vsub.s32 %v1798_v5, %v1801_v6  ;;  %v89_v11 = vsub.s32 %v1804_v7, %v1801_v6  ;;  %v86_v12 = vsub.s32 %v1794_v3, %v1801_v6 }
  0x2a   :  { %v1829_v19 = vmul.u32 8, %v47_v8  ;;  %v88_v21 = vsub.s32 %v1816_v13, %v1801_v6  ;;  %v1837_v22 = vmul.u32 8, %v48_v14  ;;  %v50_v30 = vadd.s32 40, %v1792_v2 }
  0x2b   :  { %v95_v15 = vsub.s32 %v1798_v5, %v1807_v9  ;;  %vm215_vm0 = vcmp.ge.s32.totalorder %v87_v10, 0  ;;  %vm343_vm1 = vcmp.lt.s32.totalorder %v87_v10, 8  ;;  %v97_v16 = vsub.s32 %v1804_v7, %v1807_v9 }
  0x2c   :  { %vm1823_vm2 = vmand %vm215_vm0, %vm343_vm1  ;;  %vm217_vm3 = vcmp.ge.s32.totalorder %v89_v11, 0  ;;  %vm345_vm4 = vcmp.lt.s32.totalorder %v89_v11, 8  ;;  %v94_v18 = vsub.s32 %v1794_v3, %v1807_v9  ;;  %vm214_vm12 = vcmp.ge.s32.totalorder %v86_v12, 0 }
  0x2d   :  { %vm223_vm5 = vcmp.ge.s32.totalorder %v95_v15, 0  ;;  %vm351_vm6 = vcmp.lt.s32.totalorder %v95_v15, 8  ;;  %vm225_vm7 = vcmp.ge.s32.totalorder %v97_v16, 0  ;;  %vm353_vm8 = vcmp.lt.s32.totalorder %v97_v16, 8  ;;  %vm1831_vm9 = vmand %vm217_vm3, %vm345_vm4 }
  0x2e   :  { %vm479_vm10 = vmand %vm223_vm5, %vm351_vm6  ;;  %vm342_vm13 = vcmp.lt.s32.totalorder %v86_v12, 8  ;;  %v96_v23 = vsub.s32 %v1816_v13, %v1807_v9  ;;  %vm222_vm15 = vcmp.ge.s32.totalorder %v94_v18, 0  ;;  %vm350_vm0 = vcmp.lt.s32.totalorder %v94_v18, 8 }
  0x2f   :  { %vm1522_vm11 = vmpackc.low %vm479_vm10, %vm1823_vm2  ;;  %v103_v25 = vsub.s32 %v1798_v5, %v1829_v19  ;;  %vm216_vm3 = vcmp.ge.s32.totalorder %v88_v21, 0  ;;  %vm344_vm4 = vcmp.lt.s32.totalorder %v88_v21, 8  ;;  %v111_v26 = vsub.s32 %v1798_v5, %v1837_v22 }
  0x30   :  { %1523 = vmatprep.subr.msk.bf16.mxu0 %vm1522_vm11, %v2562_v24  ;;  %vm481_vm14 = vmand %vm225_vm7, %vm353_vm8  ;;  %vm224_vm6 = vcmp.ge.s32.totalorder %v96_v23, 0  ;;  %vm352_vm10 = vcmp.lt.s32.totalorder %v96_v23, 8  ;;  %v105_v27 = vsub.s32 %v1804_v7, %v1829_v19  ;;  %v113_v28 = vsub.s32 %v1804_v7, %v1837_v22 }
  0x31   :  { %vm1554_vm1 = vmpackc.low %vm481_vm14, %vm1831_vm9  ;;  %vm231_vm9 = vcmp.ge.s32.totalorder %v103_v25, 0  ;;  %vm359_vm11 = vcmp.lt.s32.totalorder %v103_v25, 8  ;;  %vm367_vm14 = vcmp.lt.s32.totalorder %v111_v26, 8  ;;  %v102_v31 = vsub.s32 %v1794_v3, %v1829_v19 }
  0x32   :  { %1555 = vmatprep.subr.msk.bf16.mxu1 %vm1554_vm1, %v2562_v24  ;;  %vm470_vm2 = vmand %vm214_vm12, %vm342_vm13  ;;  %vm239_vm13 = vcmp.ge.s32.totalorder %v111_v26, 0  ;;  %vm233_vm1 = vcmp.ge.s32.totalorder %v105_v27, 0  ;;  %v110_v32 = vsub.s32 %v1794_v3, %v1837_v22  ;;  %v1863_v33 = vmul.u32 8, %v49_v29 }
  0x33   :  { %vm478_vm5 = vmand %vm222_vm15, %vm350_vm0  ;;  %v104_v34 = vsub.s32 %v1816_v13, %v1829_v19  ;;  %v1867_v35 = vmul.u32 8, %v50_v30  ;;  %v112_v36 = vsub.s32 %v1816_v13, %v1837_v22  ;;  %v51_v41 = vadd.s32 48, %v1792_v2 }
  0x34   :  { %vm1524_vm7 = vmpackc.low %vm478_vm5, %vm470_vm2  ;;  %vm361_vm2 = vcmp.lt.s32.totalorder %v105_v27, 8  ;;  %vm369_vm5 = vcmp.lt.s32.totalorder %v113_v28, 8  ;;  %v119_v37 = vsub.s32 %v1798_v5, %v1863_v33  ;;  %v121_v39 = vsub.s32 %v1804_v7, %v1863_v33 }
  0x35   :  { %1525 = vmatpush1.bf16.msk.msra.mxu0 %vm1524_vm7, %v2562_v24  ;;  %vm472_vm8 = vmand %vm216_vm3, %vm344_vm4  ;;  %vm241_vm4 = vcmp.ge.s32.totalorder %v113_v28, 0  ;;  %vm230_vm7 = vcmp.ge.s32.totalorder %v102_v31, 0  ;;  %v127_v38 = vsub.s32 %v1798_v5, %v1867_v35  ;;  %v129_v40 = vsub.s32 %v1804_v7, %v1867_v35 }
  0x36   :  { %vm480_vm12 = vmand %vm224_vm6, %vm352_vm10  ;;  %v52_v42 = vadd.s32 56, %v1792_v2  ;;  %v118_v43 = vsub.s32 %v1794_v3, %v1863_v33  ;;  %v126_v44 = vsub.s32 %v1794_v3, %v1867_v35  ;;  %v1889_v45 = vmul.u32 8, %v51_v41 }
  0x37   :  { %vm1556_vm15 = vmpackc.low %vm480_vm12, %vm472_vm8  ;;  %vm358_vm8 = vcmp.lt.s32.totalorder %v102_v31, 8  ;;  %vm366_vm12 = vcmp.lt.s32.totalorder %v110_v32, 8  ;;  %v120_v46 = vsub.s32 %v1816_v13, %v1863_v33  ;;  %v128_v48 = vsub.s32 %v1816_v13, %v1867_v35 }
  0x38   :  { %1557 = vmatpush1.bf16.msk.msra.mxu1 %vm1556_vm15, %v2562_v24  ;;  %vm487_vm0 = vmand %vm231_vm9, %vm359_vm11  ;;  %vm238_vm11 = vcmp.ge.s32.totalorder %v110_v32, 0  ;;  %vm232_vm15 = vcmp.ge.s32.totalorder %v104_v34, 0  ;;  %v1893_v47 = vmul.u32 8, %v52_v42  ;;  %v135_v49 = vsub.s32 %v1798_v5, %v1889_v45 }
  0x39   :  { %vm495_vm3 = vmand %vm239_vm13, %vm367_vm14  ;;  %v137_v51 = vsub.s32 %v1804_v7, %v1889_v45  ;;  %v53_v53 = vadd.s32 64, %v1792_v2  ;;  %v54_v54 = vadd.s32 72, %v1792_v2  ;;  %v134_v55 = vsub.s32 %v1794_v3, %v1889_v45 }
  0x3a   :  { %vm1526_vm6 = vmpackc.low %vm495_vm3, %vm487_vm0  ;;  %vm360_vm0 = vcmp.lt.s32.totalorder %v104_v34, 8  ;;  %vm368_vm3 = vcmp.lt.s32.totalorder %v112_v36, 8  ;;  %v143_v50 = vsub.s32 %v1798_v5, %v1893_v47  ;;  %v145_v52 = vsub.s32 %v1804_v7, %v1893_v47 }
  0x3b   :  { %1527 = vmatprep.subr.msk.bf16.mxu0 %vm1526_vm6, %v2562_v24  ;;  %vm489_vm10 = vmand %vm233_vm1, %vm361_vm2  ;;  %vm240_vm2 = vcmp.ge.s32.totalorder %v112_v36, 0  ;;  %v1913_v56 = vadd.s32 640, %v1794_v3  ;;  %v142_v57 = vsub.s32 %v1794_v3, %v1893_v47  ;;  %v1919_v58 = vadd.s32 896, %v1794_v3 }
  0x3c   :  { %vm497_vm9 = vmand %vm241_vm4, %vm369_vm5  ;;  %vm247_vm5 = vcmp.ge.s32.totalorder %v119_v37, 0  ;;  %v1921_v59 = vmul.u32 8, %v53_v53  ;;  %v136_v60 = vsub.s32 %v1816_v13, %v1889_v45  ;;  %v144_v61 = vsub.s32 %v1816_v13, %v1893_v47 }
  0x3d   :  { %vm1558_vm13 = vmpackc.low %vm497_vm9, %vm489_vm10  ;;  %vm375_vm10 = vcmp.lt.s32.totalorder %v119_v37, 8  ;;  %vm383_vm9 = vcmp.lt.s32.totalorder %v127_v38, 8  ;;  %v1927_v62 = vmul.u32 8, %v54_v54  ;;  %v1932_v63 = vsub.s32 %v1913_v56, %v1801_v6 }
  0x3e   :  { %1559 = vmatprep.subr.msk.bf16.mxu1 %vm1558_vm13, %v2562_v24  ;;  %vm486_vm14 = vmand %vm230_vm7, %vm358_vm8  ;;  %vm255_vm8 = vcmp.ge.s32.totalorder %v127_v38, 0  ;;  %vm249_vm13 = vcmp.ge.s32.totalorder %v121_v39, 0  ;;  %v1936_v0 = vsub.s32 %v1913_v56, %v1807_v9  ;;  %v1940_v4 = vsub.s32 %v1919_v58, %v1801_v6 }
  0x3f   :  { %vm494_vm1 = vmand %vm238_vm11, %vm366_vm12  ;;  %v1944_v8 = vsub.s32 %v1919_v58, %v1807_v9  ;;  %v151_v10 = vsub.s32 %v1798_v5, %v1921_v59  ;;  %v159_v11 = vsub.s32 %v1798_v5, %v1927_v62  ;;  %v55_v12 = vadd.s32 80, %v1792_v2 }
  0x40   :  { %vm1528_vm6 = vmpackc.low %vm494_vm1, %vm486_vm14  ;;  %vm377_vm14 = vcmp.lt.s32.totalorder %v121_v39, 8  ;;  %vm385_vm1 = vcmp.lt.s32.totalorder %v129_v40, 8  ;;  %v153_v14 = vsub.s32 %v1804_v7, %v1921_v59  ;;  %v161_v15 = vsub.s32 %v1804_v7, %v1927_v62 }
  0x41   :  { %1529 = vmatpush1.bf16.msk.msra.mxu0 %vm1528_vm6, %v2562_v24  ;;  %vm488_vm4 = vmand %vm232_vm15, %vm360_vm0  ;;  %vm257_vm0 = vcmp.ge.s32.totalorder %v129_v40, 0  ;;  %vm246_vm6 = vcmp.ge.s32.totalorder %v118_v43, 0  ;;  %v56_v16 = vadd.s32 88, %v1792_v2  ;;  %v1958_v17 = vmul.u32 8, %v55_v12 }
  0x42   :  { %vm496_vm7 = vmand %vm240_vm2, %vm368_vm3  ;;  %v150_v18 = vsub.s32 %v1794_v3, %v1921_v59  ;;  %v158_v20 = vsub.s32 %v1794_v3, %v1927_v62  ;;  %v152_v21 = vsub.s32 %v1816_v13, %v1921_v59  ;;  %v160_v23 = vsub.s32 %v1816_v13, %v1927_v62 }
  0x43   :  { %vm1560_vm11 = vmpackc.low %vm496_vm7, %vm488_vm4  ;;  %vm374_vm4 = vcmp.lt.s32.totalorder %v118_v43, 8  ;;  %vm382_vm7 = vcmp.lt.s32.totalorder %v126_v44, 8  ;;  %v1969_v25 = vmul.u32 8, %v56_v16  ;;  %v167_v26 = vsub.s32 %v1798_v5, %v1958_v17 }
  0x44   :  { %1561 = vmatpush1.bf16.msk.msra.mxu1 %vm1560_vm11, %v2562_v24  ;;  %vm503_vm12 = vmand %vm247_vm5, %vm375_vm10  ;;  %vm254_vm10 = vcmp.ge.s32.totalorder %v126_v44, 0  ;;  %vm248_vm11 = vcmp.ge.s32.totalorder %v120_v46, 0  ;;  %v57_v27 = vadd.s32 96, %v1792_v2  ;;  %v58_v28 = vadd.s32 104, %v1792_v2 }
  0x45   :  { %vm511_vm15 = vmand %vm255_vm8, %vm383_vm9  ;;  %v175_v29 = vsub.s32 %v1798_v5, %v1969_v25  ;;  %v169_v31 = vsub.s32 %v1804_v7, %v1958_v17  ;;  %v177_v32 = vsub.s32 %v1804_v7, %v1969_v25  ;;  %v1989_v34 = vadd.s32 512, %v1794_v3 }
  0x46   :  { %vm1530_vm2 = vmpackc.low %vm511_vm15, %vm503_vm12  ;;  %vm376_vm12 = vcmp.lt.s32.totalorder %v120_v46, 8  ;;  %vm384_vm15 = vcmp.lt.s32.totalorder %v128_v48, 8  ;;  %v1992_v36 = vadd.s32 768, %v1794_v3  ;;  %v1996_v37 = vsub.s32 %v1913_v56, %v1829_v19 }
  0x47   :  { %1531 = vmatprep.subr.msk.bf16.mxu0 %vm1530_vm2, %v2562_v24  ;;  %vm505_vm3 = vmand %vm249_vm13, %vm377_vm14  ;;  %vm256_vm14 = vcmp.ge.s32.totalorder %v128_v48, 0  ;;  %v2000_v38 = vsub.s32 %v1913_v56, %v1837_v22  ;;  %v2006_v39 = vsub.s32 %v1919_v58, %v1829_v19  ;;  %v2010_v40 = vsub.s32 %v1919_v58, %v1837_v22 }
  0x48   :  { %vm513_vm5 = vmand %vm257_vm0, %vm385_vm1  ;;  %vm263_vm1 = vcmp.ge.s32.totalorder %v135_v49, 0  ;;  %v2014_v41 = vsub.s32 %v1913_v56, %v1863_v33  ;;  %v2018_v42 = vsub.s32 %v1913_v56, %v1867_v35  ;;  %v2025_v43 = vsub.s32 %v1989_v34, %v1801_v6 }
  0x49   :  { %vm1562_vm8 = vmpackc.low %vm513_vm5, %vm505_vm3  ;;  %vm391_vm3 = vcmp.lt.s32.totalorder %v135_v49, 8  ;;  %vm399_vm5 = vcmp.lt.s32.totalorder %v143_v50, 8  ;;  %v2029_v44 = vsub.s32 %v1989_v34, %v1807_v9  ;;  %v2033_v46 = vsub.s32 %v1992_v36, %v1801_v6 }
  0x4a   :  { %1563 = vmatprep.subr.msk.bf16.mxu1 %vm1562_vm8, %v2562_v24  ;;  %vm502_vm9 = vmand %vm246_vm6, %vm374_vm4  ;;  %vm271_vm4 = vcmp.ge.s32.totalorder %v143_v50, 0  ;;  %vm265_vm8 = vcmp.ge.s32.totalorder %v137_v51, 0  ;;  %v2037_v48 = vsub.s32 %v1992_v36, %v1807_v9  ;;  %v166_v49 = vsub.s32 %v1794_v3, %v1958_v17 }
  0x4b   :  { %vm510_vm13 = vmand %vm254_vm10, %vm382_vm7  ;;  %v174_v50 = vsub.s32 %v1794_v3, %v1969_v25  ;;  %v60_v6 = vadd.s32 120, %v1792_v2  ;;  %v176_v53 = vsub.s32 %v1816_v13, %v1969_v25  ;;  %v2058_v54 = vmul.u32 8, %v57_v27 }
  0x4c   :  { %vm1532_vm2 = vmpackc.low %vm510_vm13, %vm502_vm9  ;;  %vm393_vm9 = vcmp.lt.s32.totalorder %v137_v51, 8  ;;  %vm401_vm13 = vcmp.lt.s32.totalorder %v145_v52, 8  ;;  %v59_v51 = vadd.s32 112, %v1792_v2  ;;  %v2105_v16 = vsub.s32 %v1919_v58, %v1867_v35 }
  0x4d   :  { %1533 = vmatpush1.bf16.msk.msra.mxu0 %vm1532_vm2, %v2562_v24  ;;  %vm504_vm0 = vmand %vm248_vm11, %vm376_vm12  ;;  %vm273_vm12 = vcmp.ge.s32.totalorder %v145_v52, 0  ;;  %vm262_vm2 = vcmp.ge.s32.totalorder %v134_v55, 0  ;;  %v168_v52 = vsub.s32 %v1816_v13, %v1958_v17  ;;  %v185_v12 = vsub.s32 %v1804_v7, %v2058_v54 }
  0x4e   :  { %vm512_vm6 = vmand %vm256_vm14, %vm384_vm15  ;;  %v2131_v27 = vsub.s32 %v1913_v56, %v1893_v47  ;;  %v2177_v9 = vsub.s32 %v1992_v36, %v1889_v45  ;;  %v2240_v1 = vsub.s32 %v1913_v56, %v1958_v17  ;;  %v2586_v2 = vmov 1.0|1.0  }
  0x4f   :  { %vm1564_vm10 = vmpackc.low %vm512_vm6, %vm504_vm0  ;;  %vm390_vm0 = vcmp.lt.s32.totalorder %v134_v55, 8  ;;  %vm398_vm6 = vcmp.lt.s32.totalorder %v142_v57, 8  ;;  %v2060_v55 = vmul.u32 8, %v58_v28  ;;  %v2133_v28 = vmul.u32 8, %v59_v51 }
  0x50   :  { %1565 = vmatpush1.bf16.msk.msra.mxu1 %vm1564_vm10, %v2562_v24  ;;  %vm519_vm7 = vmand %vm263_vm1, %vm391_vm3  ;;  %vm270_vm3 = vcmp.ge.s32.totalorder %v142_v57, 0  ;;  %vm264_vm10 = vcmp.ge.s32.totalorder %v136_v60, 0  ;;  %v2066_v57 = vsub.s32 %v1989_v34, %v1829_v19  ;;  %v2168_v51 = vsub.s32 %v1989_v34, %v1889_v45 }
  0x51   :  { %vm527_vm11 = vmand %vm271_vm4, %vm399_vm5  ;;  %v190_v30 = vsub.s32 %v1794_v3, %v2060_v55 }
  0x52   :  { %vm1534_vm14 = vmpackc.low %vm527_vm11, %vm519_vm7  ;;  %vm392_vm7 = vcmp.lt.s32.totalorder %v136_v60, 8  ;;  %vm400_vm11 = vcmp.lt.s32.totalorder %v144_v61, 8  ;;  %v2070_v60 = vsub.s32 %v1989_v34, %v1837_v22 }
  0x53   :  { %1535 = vmatprep.subr.msk.bf16.mxu0 %vm1534_vm14, %v2562_v24  ;;  %vm521_vm15 = vmand %vm265_vm8, %vm393_vm9  ;;  %vm272_vm9 = vcmp.ge.s32.totalorder %v144_v61, 0  ;;  %vm279_vm14 = vcmp.ge.s32.totalorder %v151_v10, 0  ;;  %v2074_v61 = vsub.s32 %v1992_v36, %v1829_v19  ;;  %v183_v19 = vsub.s32 %v1798_v5, %v2058_v54 }
  0x54   :  { %vm529_vm1 = vmand %vm273_vm12, %vm401_vm13 }
  0x55   :  { %vm1566_vm4 = vmpackc.low %vm529_vm1, %vm521_vm15  ;;  %vm407_vm15 = vcmp.lt.s32.totalorder %v151_v10, 8  ;;  %vm415_vm1 = vcmp.lt.s32.totalorder %v159_v11, 8  ;;  %v2078_v10 = vsub.s32 %v1992_v36, %v1837_v22  ;;  %v191_v22 = vsub.s32 %v1798_v5, %v2060_v55 }
  0x56   :  { %1567 = vmatprep.subr.msk.bf16.mxu1 %vm1566_vm4, %v2562_v24  ;;  %vm518_vm5 = vmand %vm262_vm2, %vm390_vm0  ;;  %vm287_vm0 = vcmp.ge.s32.totalorder %v159_v11, 0  ;;  %vm281_vm4 = vcmp.ge.s32.totalorder %v153_v14, 0  ;;  %v2189_v11 = vsub.s32 %v1913_v56, %v1927_v62 }
  0x57   :  { %vm526_vm8 = vmand %vm270_vm3, %vm398_vm6 }
  0x58   :  { %vm1536_vm12 = vmpackc.low %vm526_vm8, %vm518_vm5  ;;  %vm409_vm5 = vcmp.lt.s32.totalorder %v153_v14, 8  ;;  %vm417_vm8 = vcmp.lt.s32.totalorder %v161_v15, 8  ;;  %v193_v14 = vsub.s32 %v1804_v7, %v2060_v55 }
  0x59   :  { %1537 = vmatpush1.bf16.msk.msra.mxu0 %vm1536_vm12, %v2562_v24  ;;  %vm520_vm13 = vmand %vm264_vm10, %vm392_vm7  ;;  %vm289_vm7 = vcmp.ge.s32.totalorder %v161_v15, 0  ;;  %vm278_vm12 = vcmp.ge.s32.totalorder %v150_v18, 0  ;;  %v2101_v15 = vsub.s32 %v1919_v58, %v1863_v33 }
  0x5a   :  { %vm528_vm2 = vmand %vm272_vm9, %vm400_vm11 }
  0x5b   :  { %vm1568_vm3 = vmpackc.low %vm528_vm2, %vm520_vm13  ;;  %vm406_vm13 = vcmp.lt.s32.totalorder %v150_v18, 8  ;;  %vm414_vm2 = vcmp.lt.s32.totalorder %v158_v20, 8  ;;  %v2109_v18 = vsub.s32 %v1989_v34, %v1863_v33 }
  0x5c   :  { %1569 = vmatpush1.bf16.msk.msra.mxu1 %vm1568_vm3, %v2562_v24  ;;  %vm535_vm6 = vmand %vm279_vm14, %vm407_vm15  ;;  %vm286_vm15 = vcmp.ge.s32.totalorder %v158_v20, 0  ;;  %vm288_vm3 = vcmp.ge.s32.totalorder %v160_v23, 0  ;;  %v2113_v20 = vsub.s32 %v1989_v34, %v1867_v35 }
  0x5d   :  { %vm543_vm10 = vmand %vm287_vm0, %vm415_vm1  ;;  %vm280_vm0 = vcmp.ge.s32.totalorder %v152_v21, 0 }
  0x5e   :  { %vm1538_vm9 = vmpackc.low %vm543_vm10, %vm535_vm6  ;;  %vm408_vm6 = vcmp.lt.s32.totalorder %v152_v21, 8  ;;  %vm416_vm10 = vcmp.lt.s32.totalorder %v160_v23, 8  ;;  %v2119_v21 = vsub.s32 %v1992_v36, %v1863_v33  ;;  %v2123_v23 = vsub.s32 %v1992_v36, %v1867_v35 }
  0x5f   :  { %1539 = vmatprep.subr.msk.bf16.mxu0 %vm1538_vm9, %v2562_v24  ;;  %vm537_vm11 = vmand %vm281_vm4, %vm409_vm5  ;;  %vm295_vm5 = vcmp.ge.s32.totalorder %v167_v26, 0  ;;  %v182_v35 = vsub.s32 %v1794_v3, %v2058_v54  ;;  %v2218_v33 = vsub.s32 %v1919_v58, %v1927_v62 }
  0x60   :  { %vm545_vm14 = vmand %vm289_vm7, %vm417_vm8  ;;  %vm423_vm7 = vcmp.lt.s32.totalorder %v167_v26, 8  ;;  %v2127_v26 = vsub.s32 %v1913_v56, %v1889_v45 }
  0x61   :  { %vm1570_vm1 = vmpackc.low %vm545_vm14, %vm537_vm11  ;;  %vm431_vm14 = vcmp.lt.s32.totalorder %v175_v29, 8 }
  0x62   :  { %1571 = vmatprep.subr.msk.bf16.mxu1 %vm1570_vm1, %v2562_v24  ;;  %vm1979_vm4 = vmand %vm278_vm12, %vm406_vm13  ;;  %vm303_vm13 = vcmp.ge.s32.totalorder %v175_v29, 0  ;;  %vm425_vm1 = vcmp.lt.s32.totalorder %v169_v31, 8  ;;  %v2135_v29 = vmul.u32 8, %v60_v6  ;;  %v2172_v6 = vsub.s32 %v1989_v34, %v1893_v47 }
  0x63   :  { %vm542_vm8 = vmand %vm286_vm15, %vm414_vm2 }
  0x64   :  { %vm1540_vm9 = vmpackc.low %vm542_vm8, %vm1979_vm4  ;;  %vm302_vm8 = vcmp.ge.s32.totalorder %v174_v50, 0 }
  0x65   :  { %1541 = vmatpush1.bf16.msk.msra.mxu0 %vm1540_vm9, %v2562_v24  ;;  %vm536_vm11 = vmand %vm280_vm0, %vm408_vm6  ;;  %vm297_vm0 = vcmp.ge.s32.totalorder %v169_v31, 0  ;;  %vm305_vm6 = vcmp.ge.s32.totalorder %v177_v32, 0  ;;  %vm422_vm9 = vcmp.lt.s32.totalorder %v166_v49, 8  ;;  %v184_v31 = vsub.s32 %v1816_v13, %v2058_v54 }
  0x66   :  { %vm544_vm12 = vmand %vm288_vm3, %vm416_vm10  ;;  %vm433_vm10 = vcmp.lt.s32.totalorder %v177_v32, 8  ;;  %v192_v32 = vsub.s32 %v1816_v13, %v2060_v55 }
  0x67   :  { %vm1572_vm15 = vmpackc.low %vm544_vm12, %vm536_vm11  ;;  %vm430_vm11 = vcmp.lt.s32.totalorder %v174_v50, 8  ;;  %v2164_v50 = vsub.s32 %v1919_v58, %v1893_v47 }
  0x68   :  { %1573 = vmatpush1.bf16.msk.msra.mxu1 %vm1572_vm15, %v2562_v24  ;;  %vm2050_vm2 = vmand %vm295_vm5, %vm423_vm7  ;;  %vm294_vm7 = vcmp.ge.s32.totalorder %v166_v49, 0  ;;  %vm424_vm15 = vcmp.lt.s32.totalorder %v168_v52, 8  ;;  %v2160_v49 = vsub.s32 %v1919_v58, %v1889_v45  ;;  %v2226_v45 = vsub.s32 %v1989_v34, %v1927_v62 }
  0x69   :  { %vm559_vm3 = vmand %vm303_vm13, %vm431_vm14  ;;  %vm296_vm13 = vcmp.ge.s32.totalorder %v168_v52, 0  ;;  %vm304_vm14 = vcmp.ge.s32.totalorder %v176_v53, 0  ;;  %v2181_v52 = vsub.s32 %v1992_v36, %v1893_v47  ;;  %v199_v47 = vsub.s32 %v1798_v5, %v2133_v28 }
  0x6a   :  { %vm1542_vm4 = vmpackc.low %vm559_vm3, %vm2050_vm2  ;;  %vm432_vm2 = vcmp.lt.s32.totalorder %v176_v53, 8  ;;  %v2185_v53 = vsub.s32 %v1913_v56, %v1921_v59 }
  0x6b   :  { %1543 = vmatprep.subr.msk.bf16.mxu0 %vm1542_vm4, %v2562_v24  ;;  %vm2082_vm5 = vmand %vm297_vm0, %vm425_vm1  ;;  %vm311_vm4 = vcmp.ge.s32.totalorder %v183_v19, 0 }
  0x6c   :  { %vm561_vm12 = vmand %vm305_vm6, %vm433_vm10 }
  0x6d   :  { %vm1574_vm3 = vmpackc.low %vm561_vm12, %vm2082_vm5  ;;  %vm439_vm5 = vcmp.lt.s32.totalorder %v183_v19, 8  ;;  %vm313_vm12 = vcmp.ge.s32.totalorder %v185_v12, 0  ;;  %v207_v19 = vsub.s32 %v1798_v5, %v2135_v29  ;;  %v2222_v5 = vsub.s32 %v1989_v34, %v1921_v59 }
  0x6e   :  { %1575 = vmatprep.subr.msk.bf16.mxu1 %vm1574_vm3, %v2562_v24  ;;  %vm550_vm0 = vmand %vm294_vm7, %vm422_vm9  ;;  %vm447_vm9 = vcmp.lt.s32.totalorder %v191_v22, 8  ;;  %vm449_vm3 = vcmp.lt.s32.totalorder %v193_v14, 8 }
  0x6f   :  { %vm558_vm1 = vmand %vm302_vm8, %vm430_vm11  ;;  %vm319_vm8 = vcmp.ge.s32.totalorder %v191_v22, 0  ;;  %v201_v22 = vsub.s32 %v1804_v7, %v2133_v28 }
  0x70   :  { %vm1544_vm6 = vmpackc.low %vm558_vm1, %vm550_vm0 }
  0x71   :  { %1545 = vmatpush1.bf16.msk.msra.mxu0 %vm1544_vm6, %v2562_v24  ;;  %vm2140_vm10 = vmand %vm296_vm13, %vm424_vm15  ;;  %vm321_vm13 = vcmp.ge.s32.totalorder %v193_v14, 0  ;;  %vm441_vm15 = vcmp.lt.s32.totalorder %v185_v12, 8  ;;  %vm310_vm6 = vcmp.ge.s32.totalorder %v182_v35, 0  ;;  %v209_v12 = vsub.s32 %v1804_v7, %v2135_v29 }
  0x72   :  { %vm560_vm7 = vmand %vm304_vm14, %vm432_vm2  ;;  %v2214_v14 = vsub.s32 %v1919_v58, %v1921_v59  ;;  %v2232_v7 = vsub.s32 %v1992_v36, %v1921_v59  ;;  %v2281_v59 = vsub.s32 %v1989_v34, %v1969_v25 }
  0x73   :  { %vm1576_vm11 = vmpackc.low %vm560_vm7, %vm2140_vm10  ;;  %vm318_vm10 = vcmp.ge.s32.totalorder %v190_v30, 0 }
  0x74   :  { %1577 = vmatpush1.bf16.msk.msra.mxu1 %vm1576_vm11, %v2562_v24  ;;  %vm567_vm0 = vmand %vm311_vm4, %vm439_vm5  ;;  %vm438_vm4 = vcmp.lt.s32.totalorder %v182_v35, 8  ;;  %vm446_vm5 = vcmp.lt.s32.totalorder %v190_v30, 8  ;;  %vm440_vm11 = vcmp.lt.s32.totalorder %v184_v31, 8  ;;  %v2236_v35 = vsub.s32 %v1992_v36, %v1927_v62 }
  0x75   :  { %vm575_vm14 = vmand %vm319_vm8, %vm447_vm9  ;;  %vm312_vm8 = vcmp.ge.s32.totalorder %v184_v31, 0  ;;  %vm320_vm9 = vcmp.ge.s32.totalorder %v192_v32, 0  ;;  %v198_v62 = vsub.s32 %v1794_v3, %v2133_v28  ;;  %v206_v30 = vsub.s32 %v1794_v3, %v2135_v29 }
  0x76   :  { %vm1546_vm2 = vmpackc.low %vm575_vm14, %vm567_vm0  ;;  %vm448_vm0 = vcmp.lt.s32.totalorder %v192_v32, 8  ;;  %v200_v31 = vsub.s32 %v1816_v13, %v2133_v28  ;;  %v2269_v3 = vsub.s32 %v1919_v58, %v1958_v17  ;;  %v2273_v32 = vsub.s32 %v1919_v58, %v1969_v25 }
  0x77   :  { %1547 = vmatprep.subr.msk.bf16.mxu0 %vm1546_vm2, %v2562_v24  ;;  %vm2194_vm1 = vmand %vm313_vm12, %vm441_vm15  ;;  %vm327_vm2 = vcmp.ge.s32.totalorder %v199_v47, 0 }
  0x78   :  { %vm577_vm7 = vmand %vm321_vm13, %vm449_vm3  ;;  %2589 = vst [vmem:[#allocation13_spill] sm:$0xff] %v2269_v3  ;;  %v2290_v3 = vsub.s32 %v1992_v36, %v1969_v25 }
  0x79   :  { %vm1578_vm14 = vmpackc.low %vm577_vm7, %vm2194_vm1  ;;  %vm455_vm1 = vcmp.lt.s32.totalorder %v199_v47, 8  ;;  %vm329_vm7 = vcmp.ge.s32.totalorder %v201_v22, 0  ;;  %2590 = vst [vmem:[#allocation14_spill] sm:$0xff] %v2273_v32  ;;  %v2286_v47 = vsub.s32 %v1992_v36, %v1958_v17  ;;  %v2294_v32 = vsub.s32 %v1913_v56, %v2058_v54 }
  0x7a   :  { %1579 = vmatprep.subr.msk.bf16.mxu1 %vm1578_vm14, %v2562_v24  ;;  %vm566_vm12 = vmand %vm310_vm6, %vm438_vm4  ;;  %v2244_v24 = vsub.s32 %v1913_v56, %v1969_v25  ;;  %vm463_vm4 = vcmp.lt.s32.totalorder %v207_v19, 8  ;;  %vm465_vm14 = vcmp.lt.s32.totalorder %v209_v12, 8  ;;  %v2312_v25 = vsub.s32 %v1919_v58, %v2060_v55 }
  0x7b   :  { %vm574_vm13 = vmand %vm318_vm10, %vm446_vm5  ;;  %vm335_vm10 = vcmp.ge.s32.totalorder %v207_v19, 0  ;;  %v2316_v19 = vsub.s32 %v1989_v34, %v2058_v54 }
  0x7c   :  { %2585 = vst [vmem:[#allocation12_spill] sm:$0xff] %v2244_v24  ;;  %vm1548_vm15 = vmpackc.low %vm574_vm13, %vm566_vm12  ;;  %v208_v24 = vsub.s32 %v1816_v13, %v2135_v29  ;;  %v2277_v13 = vsub.s32 %v1989_v34, %v1958_v17  ;;  %v2308_v17 = vsub.s32 %v1919_v58, %v2058_v54 }
  0x7d   :  { %1549 = vmatpush1.bf16.msk.msra.mxu0 %vm1548_vm15, %v2586_v2  ;;  %vm2249_vm3 = vmand %vm312_vm8, %vm440_vm11  ;;  %vm337_vm8 = vcmp.ge.s32.totalorder %v209_v12, 0  ;;  %vm457_vm11 = vcmp.lt.s32.totalorder %v201_v22, 8  ;;  %vm326_vm15 = vcmp.ge.s32.totalorder %v198_v62, 0  ;;  %2592 = vst [vmem:[#allocation16_spill] sm:$0xff] %v2316_v19  ;;  %v2320_v22 = vsub.s32 %v1989_v34, %v2060_v55 }
  0x7e   :  { %vm576_vm6 = vmand %vm320_vm9, %vm448_vm0  ;;  %2591 = vst [vmem:[#allocation15_spill] sm:$0xff] %v2277_v13  ;;  %v2298_v13 = vsub.s32 %v1913_v56, %v2060_v55  ;;  %v2324_v12 = vsub.s32 %v1992_v36, %v2058_v54  ;;  %v2336_v19 = vsub.s32 %v1913_v56, %v2135_v29  ;;  %v2344_v54 = vld [vmem:[%s2558_s2] sm:$0x3]  ;;  %s1745_s2 = smov [#allocation7]  }
  0x7f   :  { %vm1580_vm5 = vmpackc.low %vm576_vm6, %vm2249_vm3  ;;  %vm454_vm3 = vcmp.lt.s32.totalorder %v198_v62, 8  ;;  %vm462_vm6 = vcmp.lt.s32.totalorder %v206_v30, 8  ;;  %v2328_v62 = vsub.s32 %v1992_v36, %v2060_v55  ;;  %v2376_v55 = vsub.s32 %v1992_v36, %v2133_v28  ;;  %s1256_s9 = sshll.u32 %s1745_s2, 4  ;;  %s1257_s9 = int_to_ptr.vmem [resolvable:$true] %s1256_s9 }
  0x80   :  { %1581 = vmatpush1.bf16.msk.msra.mxu1 %vm1580_vm5, %v2586_v2  ;;  %vm583_vm12 = vmand %vm327_vm2, %vm455_vm1  ;;  %vm334_vm1 = vcmp.ge.s32.totalorder %v206_v30, 0  ;;  %vm336_vm5 = vcmp.ge.s32.totalorder %v208_v24, 0  ;;  %v2332_v30 = vsub.s32 %v1913_v56, %v2133_v28  ;;  %v2363_v56 = vsub.s32 %v1919_v58, %v2135_v29  ;;  %s1712_s10 = scalar_lea.vmem %s1257_s9, 256  ;;  %p1717_p3 = scmp.lt.s32.totalorder %s1257_s9, %s1257_s9 }
  0x81   :  { %vm591_vm9 = vmand %vm335_vm10, %vm463_vm4  ;;  %vm328_vm4 = vcmp.ge.s32.totalorder %v200_v31, 0  ;;  %p1713_p2 = scmp.ne.s32.totalorder %s1257_s9, %s1712_s10  ;;  %p1718_p4 = scmp.lt.s32.totalorder %s1712_s10, %s1712_s10 }
  0x82   :  { %vm1550_vm0 = vmpackc.low %vm591_vm9, %vm583_vm12  ;;  %vm456_vm9 = vcmp.lt.s32.totalorder %v200_v31, 8  ;;  %vm464_vm12 = vcmp.lt.s32.totalorder %v208_v24, 8  ;;  %v2359_v24 = vsub.s32 %v1919_v58, %v2133_v28  ;;  %v2380_v31 = vsub.s32 %v1992_v36, %v2135_v29 }
  0x83   :  { %1551 = vmatprep.subr.msk.bf16.mxu0 %vm1550_vm0, %v2586_v2  ;;  %vm585_vm13 = vmand %vm329_vm7, %vm457_vm11  ;;  %v2593_v58 = vmov 0.0   ;;  %p1719_p5 = por %p1718_p4, %p1717_p3 }
  0x84   :  { %vm593_vm2 = vmand %vm337_vm8, %vm465_vm14  ;;  %vm219_vm14 = vcmp.ge.s32.totalorder %v1932_v63, 0  ;;  %v2598_v36 = vld [vmem:[#allocation16_spill] sm:$0xff] }
  0x85   :  { %vm1582_vm10 = vmpackc.low %vm593_vm2, %vm585_vm13  ;;  %vm347_vm13 = vcmp.lt.s32.totalorder %v1932_v63, 8  ;;  %vm355_vm2 = vcmp.lt.s32.totalorder %v1936_v0, 8  ;;  %v2367_v63 = vsub.s32 %v1989_v34, %v2133_v28  ;;  %p1720_p6 = pnand %p1719_p5, %p1713_p2 }
  0x86   :  { %1583 = vmatprep.subr.msk.bf16.mxu1 %vm1582_vm10, %v2586_v2  ;;  %vm582_vm0 = vmand %vm326_vm15, %vm454_vm3  ;;  %vm227_vm3 = vcmp.ge.s32.totalorder %v1936_v0, 0  ;;  %vm229_vm10 = vcmp.ge.s32.totalorder %v1944_v8, 0  ;;  %v2372_v0 = vsub.s32 %v1989_v34, %v2135_v29  ;;  %v2596_v34 = vld [vmem:[#allocation14_spill] sm:$0xff] }
  0x87   :  { %vm590_vm7 = vmand %vm334_vm1, %vm462_vm6  ;;  %vm221_vm6 = vcmp.ge.s32.totalorder %v1940_v4, 0 }
  0x88   :  { %vm1552_vm8 = vmpackc.low %vm590_vm7, %vm582_vm0 }
  0x89   :  { %1553 = vmatpush1.bf16.msk.msra.mxu0 %vm1552_vm8, %v2586_v2  ;;  %vm584_vm11 = vmand %vm328_vm4, %vm456_vm9  ;;  %vm349_vm9 = vcmp.lt.s32.totalorder %v1940_v4, 8  ;;  %vm218_vm8 = vcmp.ge.s32.totalorder %v2025_v43, 0  ;;  %v2594_v4 = vld [vmem:[#allocation12_spill] sm:$0xff] }
  0x8a   :  { %vm592_vm15 = vmand %vm336_vm5, %vm464_vm12  ;;  %vm357_vm12 = vcmp.lt.s32.totalorder %v1944_v8, 8  ;;  %v2595_v8 = vld [vmem:[#allocation13_spill] sm:$0xff] }
  0x8b   :  { %vm1584_vm1 = vmpackc.low %vm592_vm15, %vm584_vm11  ;;  %vm346_vm11 = vcmp.lt.s32.totalorder %v2025_v43, 8  ;;  %vm354_vm15 = vcmp.lt.s32.totalorder %v2029_v44, 8 }
  0x8c   :  { %1585 = vmatpush1.bf16.msk.msra.mxu1 %vm1584_vm1, %v2586_v2  ;;  %919 = vmatmul.mubr.f32.vlgmr.msra.gmra.mrb[0].mxu0 %v2344_v54  ;;  %vm475_vm4 = vmand %vm219_vm14, %vm347_vm13  ;;  %vm226_vm13 = vcmp.ge.s32.totalorder %v2029_v44, 0  ;;  %vm220_vm1 = vcmp.ge.s32.totalorder %v2033_v46, 0 }
  0x8d   :  { %vm483_vm5 = vmand %vm227_vm3, %vm355_vm2  ;;  %1060 = vmatprep.mubr.f32.mxu0 %v2593_v58 }
  0x8e   :  { %vm1586_vm0 = vmpackc.low %vm483_vm5, %vm475_vm4  ;;  %vm356_vm5 = vcmp.lt.s32.totalorder %v2037_v48, 8 }
  0x8f   :  { %990 = vmatmul.mubr.f32.vlgmr.msra.gmra.mrb[0].mxu1 %v2344_v54  ;;  %1587 = vmatprep.subr.msk.bf16.mxu0 %vm1586_vm0, %v2586_v2  ;;  %vm477_vm7 = vmand %vm221_vm6, %vm349_vm9  ;;  %vm348_vm6 = vcmp.lt.s32.totalorder %v2033_v46, 8  ;;  %vm228_vm9 = vcmp.ge.s32.totalorder %v2037_v48, 0  ;;  %vm235_vm0 = vcmp.ge.s32.totalorder %v1996_v37, 0 }
  0x90   :  { %vm485_vm14 = vmand %vm229_vm10, %vm357_vm12  ;;  %1131 = vmatprep.mubr.f32.mxu1 %v2593_v58 }
  0x91   :  { %vm1618_vm3 = vmpackc.low %vm485_vm14, %vm477_vm7  ;;  %vm363_vm7 = vcmp.lt.s32.totalorder %v1996_v37, 8  ;;  %v39_v37 = vld [vmem:[#allocation2] sm:$0xff] }
  0x92   :  { %1619 = vmatprep.subr.msk.bf16.mxu1 %vm1618_vm3, %v2586_v2  ;;  %vm474_vm2 = vmand %vm218_vm8, %vm346_vm11  ;;  %vm243_vm8 = vcmp.ge.s32.totalorder %v2000_v38, 0  ;;  %vm371_vm11 = vcmp.lt.s32.totalorder %v2000_v38, 8  ;;  %v1138_v38 = vand.u32 2147483647, %v39_v37 }
  0x93   :  { %vm482_vm4 = vmand %vm226_vm13, %vm354_vm15  ;;  %vm237_vm15 = vcmp.ge.s32.totalorder %v2006_v39, 0 }
  0x94   :  { %vm1588_vm10 = vmpackc.low %vm482_vm4, %vm474_vm2  ;;  %vm365_vm2 = vcmp.lt.s32.totalorder %v2006_v39, 8  ;;  %v1140_v39 = vsub.f32 0.0, %v1138_v38 }
  0x95   :  { %1589 = vmatpush1.bf16.msk.msra.mxu0 %vm1588_vm10, %v2586_v2  ;;  %vm476_vm12 = vmand %vm220_vm1, %vm348_vm6  ;;  %vm245_vm1 = vcmp.ge.s32.totalorder %v2010_v40, 0  ;;  %vm373_vm6 = vcmp.lt.s32.totalorder %v2010_v40, 8 }
  0x96   :  { %vm484_vm14 = vmand %vm228_vm9, %vm356_vm5  ;;  %vm234_vm5 = vcmp.ge.s32.totalorder %v2066_v57, 0  ;;  %v1142_v40 = vmul.f32 1.442695, %v1140_v39 }
  0x97   :  { %vm1620_vm3 = vmpackc.low %vm484_vm14, %vm476_vm12  ;;  %vm362_vm12 = vcmp.lt.s32.totalorder %v2066_v57, 8 }
  0x98   :  { %1621 = vmatpush1.bf16.msk.msra.mxu1 %vm1620_vm3, %v2586_v2  ;;  %vm491_vm13 = vmand %vm235_vm0, %vm363_vm7  ;;  %vm242_vm0 = vcmp.ge.s32.totalorder %v2070_v60, 0  ;;  %vm370_vm7 = vcmp.lt.s32.totalorder %v2070_v60, 8  ;;  %1656 = vpow2.f32 %v1142_v40 }
  0x99   :  { %vm499_vm4 = vmand %vm243_vm8, %vm371_vm11  ;;  %vm236_vm11 = vcmp.ge.s32.totalorder %v2074_v61, 0 }
  0x9a   :  { %vm1590_vm10 = vmpackc.low %vm499_vm4, %vm491_vm13  ;;  %vm364_vm13 = vcmp.lt.s32.totalorder %v2074_v61, 8 }
  0x9b   :  { %1591 = vmatprep.subr.msk.bf16.mxu0 %vm1590_vm10, %v2586_v2  ;;  %vm493_vm9 = vmand %vm237_vm15, %vm365_vm2  ;;  %vm244_vm15 = vcmp.ge.s32.totalorder %v2078_v10, 0  ;;  %vm372_vm2 = vcmp.lt.s32.totalorder %v2078_v10, 8 }
  0x9c   :  { %vm501_vm14 = vmand %vm245_vm1, %vm373_vm6  ;;  %vm251_vm6 = vcmp.ge.s32.totalorder %v2014_v41, 0 }
  0x9d   :  { %vm1622_vm3 = vmpackc.low %vm501_vm14, %vm493_vm9  ;;  %vm379_vm9 = vcmp.lt.s32.totalorder %v2014_v41, 8 }
  0x9e   :  { %1623 = vmatprep.subr.msk.bf16.mxu1 %vm1622_vm3, %v2586_v2  ;;  %vm490_vm8 = vmand %vm234_vm5, %vm362_vm12  ;;  %vm259_vm5 = vcmp.ge.s32.totalorder %v2018_v42, 0  ;;  %vm387_vm12 = vcmp.lt.s32.totalorder %v2018_v42, 8 }
  0x9f   :  { %vm498_vm4 = vmand %vm242_vm0, %vm370_vm7  ;;  %vm253_vm7 = vcmp.ge.s32.totalorder %v2101_v15, 0 }
  0xa0   :  { %vm1592_vm10 = vmpackc.low %vm498_vm4, %vm490_vm8  ;;  %vm381_vm8 = vcmp.lt.s32.totalorder %v2101_v15, 8 }
  0xa1   :  { %1593 = vmatpush1.bf16.msk.msra.mxu0 %vm1592_vm10, %v2586_v2  ;;  %vm492_vm1 = vmand %vm236_vm11, %vm364_vm13  ;;  %vm261_vm11 = vcmp.ge.s32.totalorder %v2105_v16, 0  ;;  %vm389_vm13 = vcmp.lt.s32.totalorder %v2105_v16, 8  ;;  %v1744_v16 = vmov 1983009808  }
  0xa2   :  { %vm500_vm14 = vmand %vm244_vm15, %vm372_vm2  ;;  %vm250_vm2 = vcmp.ge.s32.totalorder %v2109_v18, 0  ;;  %v1657_v41 = vpop.eup %1656 }
  0xa3   :  { %vm1624_vm3 = vmpackc.low %vm500_vm14, %vm492_vm1  ;;  %vm378_vm1 = vcmp.lt.s32.totalorder %v2109_v18, 8  ;;  %v1146_v42 = vadd.f32 1.0, %v1657_v41  ;;  %v1181_v60 = vmul.f32 -0.5, %v1657_v41  ;;  %v1213_v18 = vunpack.c.l.s4 %v1744_v16 }
  0xa4   :  { %1625 = vmatpush1.bf16.msk.msra.mxu1 %vm1624_vm3, %v2586_v2  ;;  %vm507_vm0 = vmand %vm251_vm6, %vm379_vm9  ;;  %vm258_vm6 = vcmp.ge.s32.totalorder %v2113_v20, 0  ;;  %vm386_vm9 = vcmp.lt.s32.totalorder %v2113_v20, 8  ;;  %v1184_v20 = vand.u32 2147483647, %v1657_v41 }
  0xa5   :  { %vm515_vm4 = vmand %vm259_vm5, %vm387_vm12  ;;  %vm252_vm12 = vcmp.ge.s32.totalorder %v2119_v21, 0  ;;  %1658 = vrcp.f32 %v1146_v42  ;;  %v1182_v10 = vadd.f32 1.0, %v1181_v60 }
  0xa6   :  { %vm1594_vm10 = vmpackc.low %vm515_vm4, %vm507_vm0  ;;  %vm380_vm0 = vcmp.lt.s32.totalorder %v2119_v21, 8  ;;  %1660 = vlog2.f32 %v1146_v42 }
  0xa7   :  { %1595 = vmatprep.subr.msk.bf16.mxu0 %vm1594_vm10, %v2586_v2  ;;  %vm509_vm15 = vmand %vm253_vm7, %vm381_vm8  ;;  %vm260_vm7 = vcmp.ge.s32.totalorder %v2123_v23, 0  ;;  %vm388_vm8 = vcmp.lt.s32.totalorder %v2123_v23, 8  ;;  %v1183_v29 = vmul.f32 %v1657_v41, %v1182_v10 }
  0xa8   :  { %vm517_vm14 = vmand %vm261_vm11, %vm389_vm13  ;;  %vm267_vm13 = vcmp.ge.s32.totalorder %v2127_v26, 0 }
  0xa9   :  { %vm1626_vm3 = vmpackc.low %vm517_vm14, %vm509_vm15  ;;  %vm395_vm15 = vcmp.lt.s32.totalorder %v2127_v26, 8  ;;  %v1172_v26 = vmax.f32 %v39_v37, 0.0 }
  0xaa   :  { %1627 = vmatprep.subr.msk.bf16.mxu1 %vm1626_vm3, %v2586_v2  ;;  %vm506_vm5 = vmand %vm250_vm2, %vm378_vm1  ;;  %vm275_vm2 = vcmp.ge.s32.totalorder %v2131_v27, 0  ;;  %vm403_vm1 = vcmp.lt.s32.totalorder %v2131_v27, 8 }
  0xab   :  { %vm514_vm4 = vmand %vm258_vm6, %vm386_vm9  ;;  %vm269_vm9 = vcmp.ge.s32.totalorder %v2160_v49, 0 }
  0xac   :  { %vm1596_vm10 = vmpackc.low %vm514_vm4, %vm506_vm5  ;;  %vm397_vm5 = vcmp.lt.s32.totalorder %v2160_v49, 8  ;;  %v1214_v49 = vunpack.c.0.s8 %v1213_v18 }
  0xad   :  { %1597 = vmatpush1.bf16.msk.msra.mxu0 %vm1596_vm10, %v2586_v2  ;;  %vm508_vm11 = vmand %vm252_vm12, %vm380_vm0  ;;  %vm277_vm12 = vcmp.ge.s32.totalorder %v2164_v50, 0  ;;  %vm405_vm0 = vcmp.lt.s32.totalorder %v2164_v50, 8 }
  0xae   :  { %vm516_vm14 = vmand %vm260_vm7, %vm388_vm8  ;;  %vm266_vm8 = vcmp.ge.s32.totalorder %v2168_v51, 0 }
  0xaf   :  { %vm1628_vm3 = vmpackc.low %vm516_vm14, %vm508_vm11  ;;  %vm394_vm11 = vcmp.lt.s32.totalorder %v2168_v51, 8  ;;  %v1659_v43 = vpop.eup %1658 }
  0xb0   :  { %1629 = vmatpush1.bf16.msk.msra.mxu1 %vm1628_vm3, %v2586_v2  ;;  %vm523_vm6 = vmand %vm267_vm13, %vm395_vm15  ;;  %vm274_vm13 = vcmp.ge.s32.totalorder %v2172_v6, 0  ;;  %vm402_vm15 = vcmp.lt.s32.totalorder %v2172_v6, 8  ;;  %v1154_v44 = vmul.f32 %v1659_v43, %v1657_v41  ;;  %v1661_v15 = vpop.eup %1660 }
  0xb1   :  { %vm531_vm4 = vmand %vm275_vm2, %vm403_vm1  ;;  %vm268_vm1 = vcmp.ge.s32.totalorder %v2177_v9, 0  ;;  %v1180_v28 = vmul.f32 0.6931472, %v1661_v15 }
  0xb2   :  { %vm1598_vm10 = vmpackc.low %vm531_vm4, %vm523_vm6  ;;  %vm396_vm6 = vcmp.lt.s32.totalorder %v2177_v9, 8 }
  0xb3   :  { %1599 = vmatprep.subr.msk.bf16.mxu0 %vm1598_vm10, %v2586_v2  ;;  %vm525_vm7 = vmand %vm269_vm9, %vm397_vm5  ;;  %vm276_vm9 = vcmp.ge.s32.totalorder %v2181_v52, 0  ;;  %vm404_vm5 = vcmp.lt.s32.totalorder %v2181_v52, 8 }
  0xb4   :  { %vm533_vm14 = vmand %vm277_vm12, %vm405_vm0  ;;  %vm283_vm0 = vcmp.ge.s32.totalorder %v2185_v53, 0 }
  0xb5   :  { %vm1630_vm3 = vmpackc.low %vm533_vm14, %vm525_vm7  ;;  %vm411_vm7 = vcmp.lt.s32.totalorder %v2185_v53, 8 }
  0xb6   :  { %1631 = vmatprep.subr.msk.bf16.mxu1 %vm1630_vm3, %v2586_v2  ;;  %vm522_vm2 = vmand %vm266_vm8, %vm394_vm11  ;;  %vm291_vm8 = vcmp.ge.s32.totalorder %v2189_v11, 0  ;;  %vm419_vm11 = vcmp.lt.s32.totalorder %v2189_v11, 8  ;;  %v2599_v11 = vld [vmem:[#allocation11_spill] sm:$0xff] }
  0xb7   :  { %vm530_vm4 = vmand %vm274_vm13, %vm402_vm15  ;;  %vm285_vm15 = vcmp.ge.s32.totalorder %v2214_v14, 0 }
  0xb8   :  { %vm1600_vm10 = vmpackc.low %vm530_vm4, %vm522_vm2  ;;  %vm413_vm2 = vcmp.lt.s32.totalorder %v2214_v14, 8  ;;  %v1217_v14 = vsub.s32 %v1214_v49, %v2599_v11 }
  0xb9   :  { %1601 = vmatpush1.bf16.msk.msra.mxu0 %vm1600_vm10, %v2586_v2  ;;  %vm524_vm12 = vmand %vm268_vm1, %vm396_vm6  ;;  %vm293_vm1 = vcmp.ge.s32.totalorder %v2218_v33, 0  ;;  %vm421_vm6 = vcmp.lt.s32.totalorder %v2218_v33, 8 }
  0xba   :  { %vm532_vm14 = vmand %vm276_vm9, %vm404_vm5  ;;  %vm282_vm5 = vcmp.ge.s32.totalorder %v2222_v5, 0 }
  0xbb   :  { %vm1632_vm3 = vmpackc.low %vm532_vm14, %vm524_vm12  ;;  %vm410_vm12 = vcmp.lt.s32.totalorder %v2222_v5, 8 }
  0xbc   :  { %1633 = vmatpush1.bf16.msk.msra.mxu1 %vm1632_vm3, %v2586_v2  ;;  %vm539_vm13 = vmand %vm283_vm0, %vm411_vm7  ;;  %vm290_vm0 = vcmp.ge.s32.totalorder %v2226_v45, 0  ;;  %vm418_vm7 = vcmp.lt.s32.totalorder %v2226_v45, 8 }
  0xbd   :  { %vm547_vm4 = vmand %vm291_vm8, %vm419_vm11  ;;  %vm284_vm11 = vcmp.ge.s32.totalorder %v2232_v7, 0 }
  0xbe   :  { %vm1602_vm10 = vmpackc.low %vm547_vm4, %vm539_vm13  ;;  %vm412_vm13 = vcmp.lt.s32.totalorder %v2232_v7, 8 }
  0xbf   :  { %1603 = vmatprep.subr.msk.bf16.mxu0 %vm1602_vm10, %v2586_v2  ;;  %vm541_vm9 = vmand %vm285_vm15, %vm413_vm2  ;;  %vm292_vm15 = vcmp.ge.s32.totalorder %v2236_v35, 0  ;;  %vm420_vm2 = vcmp.lt.s32.totalorder %v2236_v35, 8 }
  0xc0   :  { %vm549_vm14 = vmand %vm293_vm1, %vm421_vm6  ;;  %vm299_vm6 = vcmp.ge.s32.totalorder %v2240_v1, 0 }
  0xc1   :  { %vm1634_vm3 = vmpackc.low %vm549_vm14, %vm541_vm9  ;;  %vm427_vm9 = vcmp.lt.s32.totalorder %v2240_v1, 8  ;;  %v2597_v1 = vld [vmem:[#allocation15_spill] sm:$0xff] }
  0xc2   :  { %1635 = vmatprep.subr.msk.bf16.mxu1 %vm1634_vm3, %v2586_v2  ;;  %vm538_vm8 = vmand %vm282_vm5, %vm410_vm12  ;;  %vm307_vm5 = vcmp.ge.s32.totalorder %v2594_v4, 0  ;;  %vm435_vm12 = vcmp.lt.s32.totalorder %v2594_v4, 8 }
  0xc3   :  { %vm546_vm4 = vmand %vm290_vm0, %vm418_vm7  ;;  %vm301_vm7 = vcmp.ge.s32.totalorder %v2595_v8, 0 }
  0xc4   :  { %vm1604_vm10 = vmpackc.low %vm546_vm4, %vm538_vm8  ;;  %vm429_vm8 = vcmp.lt.s32.totalorder %v2595_v8, 8 }
  0xc5   :  { %1605 = vmatpush1.bf16.msk.msra.mxu0 %vm1604_vm10, %v2586_v2  ;;  %vm540_vm1 = vmand %vm284_vm11, %vm412_vm13  ;;  %vm309_vm11 = vcmp.ge.s32.totalorder %v2596_v34, 0  ;;  %vm437_vm13 = vcmp.lt.s32.totalorder %v2596_v34, 8 }
  0xc6   :  { %vm548_vm14 = vmand %vm292_vm15, %vm420_vm2  ;;  %vm298_vm2 = vcmp.ge.s32.totalorder %v2597_v1, 0 }
  0xc7   :  { %vm1636_vm3 = vmpackc.low %vm548_vm14, %vm540_vm1  ;;  %vm426_vm1 = vcmp.lt.s32.totalorder %v2597_v1, 8 }
  0xc8   :  { %1637 = vmatpush1.bf16.msk.msra.mxu1 %vm1636_vm3, %v2586_v2  ;;  %vm555_vm0 = vmand %vm299_vm6, %vm427_vm9  ;;  %vm306_vm6 = vcmp.ge.s32.totalorder %v2281_v59, 0  ;;  %vm434_vm9 = vcmp.lt.s32.totalorder %v2281_v59, 8 }
  0xc9   :  { %vm563_vm4 = vmand %vm307_vm5, %vm435_vm12  ;;  %vm300_vm12 = vcmp.ge.s32.totalorder %v2286_v47, 0 }
  0xca   :  { %vm1606_vm10 = vmpackc.low %vm563_vm4, %vm555_vm0  ;;  %vm428_vm0 = vcmp.lt.s32.totalorder %v2286_v47, 8 }
  0xcb   :  { %1607 = vmatprep.subr.msk.bf16.mxu0 %vm1606_vm10, %v2586_v2  ;;  %vm557_vm15 = vmand %vm301_vm7, %vm429_vm8  ;;  %vm308_vm7 = vcmp.ge.s32.totalorder %v2290_v3, 0  ;;  %vm436_vm8 = vcmp.lt.s32.totalorder %v2290_v3, 8 }
  0xcc   :  { %vm565_vm14 = vmand %vm309_vm11, %vm437_vm13  ;;  %vm315_vm13 = vcmp.ge.s32.totalorder %v2294_v32, 0 }
  0xcd   :  { %vm1638_vm3 = vmpackc.low %vm565_vm14, %vm557_vm15  ;;  %vm443_vm15 = vcmp.lt.s32.totalorder %v2294_v32, 8 }
  0xce   :  { %1639 = vmatprep.subr.msk.bf16.mxu1 %vm1638_vm3, %v2586_v2  ;;  %vm554_vm5 = vmand %vm298_vm2, %vm426_vm1  ;;  %vm323_vm2 = vcmp.ge.s32.totalorder %v2298_v13, 0  ;;  %vm451_vm1 = vcmp.lt.s32.totalorder %v2298_v13, 8 }
  0xcf   :  { %vm562_vm4 = vmand %vm306_vm6, %vm434_vm9  ;;  %vm317_vm9 = vcmp.ge.s32.totalorder %v2308_v17, 0 }
  0xd0   :  { %vm1608_vm10 = vmpackc.low %vm562_vm4, %vm554_vm5  ;;  %vm445_vm5 = vcmp.lt.s32.totalorder %v2308_v17, 8 }
  0xd1   :  { %1609 = vmatpush1.bf16.msk.msra.mxu0 %vm1608_vm10, %v2586_v2  ;;  %vm556_vm11 = vmand %vm300_vm12, %vm428_vm0  ;;  %vm325_vm12 = vcmp.ge.s32.totalorder %v2312_v25, 0  ;;  %vm453_vm0 = vcmp.lt.s32.totalorder %v2312_v25, 8  ;;  %v40_v25 = vld [vmem:[#allocation2 + $0x8] sm:$0xff] }
  0xd2   :  { %vm564_vm14 = vmand %vm308_vm7, %vm436_vm8  ;;  %vm314_vm8 = vcmp.ge.s32.totalorder %v2598_v36, 0 }
  0xd3   :  { %vm1640_vm3 = vmpackc.low %vm564_vm14, %vm556_vm11  ;;  %vm442_vm11 = vcmp.lt.s32.totalorder %v2598_v36, 8 }
  0xd4   :  { %1641 = vmatpush1.bf16.msk.msra.mxu1 %vm1640_vm3, %v2586_v2  ;;  %vm571_vm6 = vmand %vm315_vm13, %vm443_vm15  ;;  %vm322_vm13 = vcmp.ge.s32.totalorder %v2320_v22, 0  ;;  %vm450_vm15 = vcmp.lt.s32.totalorder %v2320_v22, 8 }
  0xd5   :  { %vm579_vm4 = vmand %vm323_vm2, %vm451_vm1  ;;  %vm316_vm1 = vcmp.ge.s32.totalorder %v2324_v12, 0 }
  0xd6   :  { %vm1610_vm10 = vmpackc.low %vm579_vm4, %vm571_vm6  ;;  %vm444_vm6 = vcmp.lt.s32.totalorder %v2324_v12, 8 }
  0xd7   :  { %1611 = vmatprep.subr.msk.bf16.mxu0 %vm1610_vm10, %v2586_v2  ;;  %vm573_vm7 = vmand %vm317_vm9, %vm445_vm5  ;;  %vm324_vm9 = vcmp.ge.s32.totalorder %v2328_v62, 0  ;;  %vm452_vm5 = vcmp.lt.s32.totalorder %v2328_v62, 8 }
  0xd8   :  { %vm581_vm14 = vmand %vm325_vm12, %vm453_vm0  ;;  %vm331_vm0 = vcmp.ge.s32.totalorder %v2332_v30, 0 }
  0xd9   :  { %vm1642_vm3 = vmpackc.low %vm581_vm14, %vm573_vm7  ;;  %vm459_vm7 = vcmp.lt.s32.totalorder %v2332_v30, 8 }
  0xda   :  { %1643 = vmatprep.subr.msk.bf16.mxu1 %vm1642_vm3, %v2586_v2  ;;  %vm570_vm2 = vmand %vm314_vm8, %vm442_vm11  ;;  %vm339_vm8 = vcmp.ge.s32.totalorder %v2336_v19, 0  ;;  %vm467_vm11 = vcmp.lt.s32.totalorder %v2336_v19, 8  ;;  %v1139_v19 = vand.u32 2147483647, %v40_v25 }
  0xdb   :  { %vm578_vm4 = vmand %vm322_vm13, %vm450_vm15  ;;  %vm333_vm15 = vcmp.ge.s32.totalorder %v2359_v24, 0 }
  0xdc   :  { %vm1612_vm10 = vmpackc.low %vm578_vm4, %vm570_vm2  ;;  %vm461_vm2 = vcmp.lt.s32.totalorder %v2359_v24, 8  ;;  %v1141_v22 = vsub.f32 0.0, %v1139_v19 }
  0xdd   :  { %1613 = vmatpush1.bf16.msk.msra.mxu0 %vm1612_vm10, %v2586_v2  ;;  %vm572_vm12 = vmand %vm316_vm1, %vm444_vm6  ;;  %vm341_vm1 = vcmp.ge.s32.totalorder %v2363_v56, 0  ;;  %vm469_vm6 = vcmp.lt.s32.totalorder %v2363_v56, 8 }
  0xde   :  { %vm580_vm14 = vmand %vm324_vm9, %vm452_vm5  ;;  %vm330_vm5 = vcmp.ge.s32.totalorder %v2367_v63, 0  ;;  %v1144_v12 = vmul.f32 1.442695, %v1141_v22 }
  0xdf   :  { %vm1644_vm3 = vmpackc.low %vm580_vm14, %vm572_vm12  ;;  %vm458_vm12 = vcmp.lt.s32.totalorder %v2367_v63, 8 }
  0xe0   :  { %1645 = vmatpush1.bf16.msk.msra.mxu1 %vm1644_vm3, %v2586_v2  ;;  %vm587_vm13 = vmand %vm331_vm0, %vm459_vm7  ;;  %vm338_vm0 = vcmp.ge.s32.totalorder %v2372_v0, 0  ;;  %vm466_vm7 = vcmp.lt.s32.totalorder %v2372_v0, 8  ;;  %1662 = vpow2.f32 %v1144_v12 }
  0xe1   :  { %vm595_vm4 = vmand %vm339_vm8, %vm467_vm11  ;;  %vm332_vm11 = vcmp.ge.s32.totalorder %v2376_v55, 0 }
  0xe2   :  { %vm1614_vm10 = vmpackc.low %vm595_vm4, %vm587_vm13  ;;  %vm460_vm13 = vcmp.lt.s32.totalorder %v2376_v55, 8  ;;  %v42_v55 = vld [vmem:[#allocation5 + $0x8] sm:$0xff] }
  0xe3   :  { %1615 = vmatprep.subr.msk.bf16.mxu0 %vm1614_vm10, %v2586_v2  ;;  %vm589_vm9 = vmand %vm333_vm15, %vm461_vm2  ;;  %vm340_vm15 = vcmp.ge.s32.totalorder %v2380_v31, 0  ;;  %vm468_vm2 = vcmp.lt.s32.totalorder %v2380_v31, 8  ;;  %v1159_v1 = vmul.f32 -0.5, %v42_v55  ;;  %v1175_v38 = vmul.f32 %v42_v55, %v40_v25 }
  0xe4   :  { %vm597_vm14 = vmand %vm341_vm1, %vm469_vm6 }
  0xe5   :  { %vm1646_vm3 = vmpackc.low %vm597_vm14, %vm589_vm9  ;;  %vm1153_vm14 = vcmp.ge.f32.partialorder %v40_v25, 0.0  ;;  %v1161_v41 = vadd.f32 0.75, %v1159_v1 }
  0xe6   :  { %1647 = vmatprep.subr.msk.bf16.mxu1 %vm1646_vm3, %v2586_v2  ;;  %vm586_vm8 = vmand %vm330_vm5, %vm458_vm12  ;;  %vm1152_vm5 = vcmp.ge.f32.partialorder %v39_v37, 0.0  ;;  %vm1185_vm12 = vcmp.lt.f32.partialorder %v1184_v20, 0.0004427343 }
  0xe7   :  { %vm594_vm4 = vmand %vm338_vm0, %vm466_vm7  ;;  %v1156_v46 = vsel %vm1152_vm5, %v1659_v43, %v1154_v44  ;;  %v1186_v52 = vsel %vm1185_vm12, %v1183_v29, %v1180_v28 }
  0xe8   :  { %vm1616_vm10 = vmpackc.low %vm594_vm4, %vm586_vm8  ;;  %v1162_v48 = vmul.f32 2.0, %v1156_v46 }
  0xe9   :  { %1617 = vmatpush1.bf16.msk.msra.mxu0 %vm1616_vm10, %v2586_v2  ;;  %vm588_vm1 = vmand %vm332_vm11, %vm460_vm13 }
  0xea   :  { %vm596_vm6 = vmand %vm340_vm15, %vm468_vm2  ;;  %v1164_v57 = vsub.f32 1.0, %v1162_v48  ;;  %v1663_v62 = vpop.eup %1662 }
  0xeb   :  { %vm1648_vm9 = vmpackc.low %vm596_vm6, %vm588_vm1  ;;  %v1147_v30 = vadd.f32 1.0, %v1663_v62  ;;  %v1190_v31 = vmul.f32 -0.5, %v1663_v62  ;;  %v1193_v34 = vand.u32 2147483647, %v1663_v62 }
  0xec   :  { %1649 = vmatpush1.bf16.msk.msra.mxu1 %vm1648_vm9, %v2586_v2  ;;  %1061 = vmatmul.mubr.f32.vlgmr.msra.gmra.mrb[2].mxu0 %v2344_v54  ;;  %v41_v2 = vld [vmem:[#allocation5] sm:$0xff] }
  0xed   :  { %v1166_v61 = vmul.f32 %v1164_v57, %v41_v2  ;;  %v1158_v21 = vmul.f32 -0.5, %v41_v2  ;;  %v1174_v27 = vmul.f32 %v41_v2, %v39_v37  ;;  %1664 = vrcp.f32 %v1147_v30 }
  0xee   :  { %1666 = vlog2.f32 %v1147_v30  ;;  %v1191_v4 = vadd.f32 1.0, %v1190_v31  ;;  %v1173_v37 = vmax.f32 %v40_v25, 0.0  ;;  %vm1194_vm0 = vcmp.lt.f32.partialorder %v1193_v34, 0.0004427343 }
  0xef   :  { %1132 = vmatmul.mubr.f32.vlgmr.msra.gmra.mrb[2].mxu1 %v2344_v54  ;;  %v1168_v23 = vadd.f32 %v1166_v61, %v1156_v46  ;;  %v1160_v50 = vadd.f32 0.75, %v1158_v21  ;;  %v1176_v6 = vsub.f32 %v1172_v26, %v1174_v27 }
  0xf0   :  { %v1192_v40 = vmul.f32 %v1663_v62, %v1191_v4  ;;  %v1177_v43 = vsub.f32 %v1173_v37, %v1175_v38 }
  0xf1   :  { %v1170_v51 = vmul.f32 %v1168_v23, %v1168_v23  ;;  %v1196_v45 = vadd.f32 %v1186_v52, %v1176_v6 }
  0xf3   :  { %v1198_v7 = vmul.f32 %v1170_v51, %v1160_v50 }
  0xf5   :  { %v1200_v59 = vmul.f32 %v1198_v7, %v1196_v45 }
  0xf7   :  { %v1665_v54 = vpop.eup %1664 }
  0xf8   :  { %v1155_v24 = vmul.f32 %v1665_v54, %v1663_v62  ;;  %v1667_v8 = vpop.eup %1666 }
  0xf9   :  { %v1189_v39 = vmul.f32 0.6931472, %v1667_v8 }
  0xfa   :  { %v1157_v56 = vsel %vm1153_vm14, %v1665_v54, %v1155_v24 }
  0xfb   :  { %v1163_v63 = vmul.f32 2.0, %v1157_v56  ;;  %v1195_v46 = vsel %vm1194_vm0, %v1192_v40, %v1189_v39 }
  0xfc   :  { %v1197_v60 = vadd.f32 %v1195_v46, %v1177_v43 }
  0xfd   :  { %v1165_v0 = vsub.f32 1.0, %v1163_v63 }
  0xff   :  { %v1167_v58 = vmul.f32 %v1165_v0, %v42_v55 }
 0x101   :  { %v1169_v36 = vadd.f32 %v1167_v58, %v1157_v56 }
 0x103   :  { %v1171_v42 = vmul.f32 %v1169_v36, %v1169_v36 }
 0x105   :  { %v1199_v61 = vmul.f32 %v1171_v42, %v1161_v41 }
 0x107   :  { %v1201_v20 = vmul.f32 %v1199_v61, %v1197_v60 }
 0x15f   :  { %v920_v9 = vpop.f32.mrb[0].mxu0 }
 0x160   :  { %v922_v53 = vpop.f32.mrb[1].mxu0 }
 0x161   :  { %v1210_v33 = vcombine.low %v920_v9, %v922_v53 }
 0x162   :  { %v991_v5 = vpop.f32.mrb[0].mxu1 }
 0x163   :  { %v993_v35 = vpop.f32.mrb[1].mxu1  ;;  %v1218_v3 = vrot.slane %v1210_v33, %v1217_v14 }
 0x164   :  { %v1211_v32 = vcombine.low %v991_v5, %v993_v35 }
 0x166   :  { %v1225_v13 = vrot.slane %v1211_v32, %v1217_v14 }
 0x168   :  { %v1226_v47 = vcombine.low %v1218_v3, %v1225_v13 }
 0x16a   :  { %v1246_v17 = vmul.f32 %v1226_v47, %v1200_v59 }
 0x16c   :  { %1248 = vst [vmem:[#allocation7] sm:$0xff] %v1246_v17 }
 0x1bf   :  { %v1062_v44 = vpop.f32.mrb[2].mxu0 }
 0x1c0   :  { %v1064_v48 = vpop.f32.mrb[3].mxu0 }
 0x1c1   :  { %v1227_v57 = vcombine.low %v1062_v44, %v1064_v48 }
 0x1c2   :  { %v1133_v2 = vpop.f32.mrb[2].mxu1 }
 0x1c3   :  { %v1135_v10 = vpop.f32.mrb[3].mxu1  ;;  %v1235_v15 = vrot.slane %v1227_v57, %v1217_v14 }
 0x1c4   :  { %v1228_v16 = vcombine.low %v1133_v2, %v1135_v10 }
 0x1c6   :  { %v1242_v18 = vrot.slane %v1228_v16, %v1217_v14 }
 0x1c8   :  { %v1243_v21 = vcombine.low %v1235_v15, %v1242_v18 }
 0x1ca   :  { %v1247_v23 = vmul.f32 %v1243_v21, %v1201_v20 }
 0x1cc   :  { %1249 = vst [vmem:[#allocation7 + $0x8] sm:$0xff] %v1247_v23 }
 0x1cd   :  { %1723 = shalt.err (!%p1720_p6)
}
 0x1ce   :  { %s1724_s13 = scalar_lea.hbm %s2559_s3, 256 }
 0x1cf   :  { %p1725_p7 = scmp.ne.s32.totalorder %s2559_s3, %s1724_s13  ;;  %p1728_p8 = scmp.lt.u32.totalorder %s1724_s13, %s2559_s3 }
 0x1d1   :  { %p1730_p9 = pnand %p1728_p8, %p1725_p7 }
 0x1d3   :  { %1733 = shalt.err (!%p1730_p9)
}
 0x1d4   :  { %1259 = dma.vmem_to_hbm [thread:$0]  %s1257_s9, 256, %s2559_s3, [#allocation4]  }
 0x1d5   :  { %1738 = dma.done.wait [#allocation4], 256  }
 0x1d6   :  { %1739 = vsyncadd [#allocation4], 4294967040 }
 0x1d7   :  { %1263 = vsyncpa [#allocation3], 1 }
 0x1d8   :  { %1264 = vsyncpa [#allocation6], 1 }
 0x1d9   :  { %1265 = vsyncpa [#allocation4], 1 }

</bundles_post_ra>
